<compile_context>
chip_gen: v6e
topology: v6e:2x2x1
jax: 0.10.0
libtpu: 0.0.40
codegen_flags: <defaults>
</compile_context>

<pallas_src>
import jax
import jax.numpy as jnp
from jax.experimental import pallas as pl
from jax.experimental.pallas import tpu as pltpu

LANE = 128  # TPU lane width: hidden (intermediate) feature dim is padded to this.


def _round_up(n, m):
    return (n + m - 1) // m * m


def mlp_kernel(x_ref, w1_ref, b1_ref, w2_ref, b2_ref, w3_ref, b3_ref, o_ref):
    # One (TB, *) batch tile. Whole network fused; h1/h2 never leave VMEM.
    # x arrives as f32 and is cast to bf16 on the VPU (free slot, mem-bound kernel).
    x = x_ref[...].astype(jnp.bfloat16)                               # (TB, IN)
    h1 = jnp.dot(x, w1_ref[...], preferred_element_type=jnp.float32) + b1_ref[...]
    h1 = jnp.maximum(h1, 0.0)                                         # f32 (TB, HP)
    h2 = jnp.dot(h1.astype(jnp.bfloat16), w2_ref[...],
                 preferred_element_type=jnp.float32) + b2_ref[...]
    h2 = jnp.maximum(h2, 0.0)                                         # f32 (TB, HP)
    out = jnp.dot(h2.astype(jnp.bfloat16), w3_ref[...],
                  preferred_element_type=jnp.float32) + b3_ref[...]   # f32 (TB, OP)
    o_ref[...] = out.astype(o_ref.dtype)


def _mlp_forward(x, w1, b1, w2, b2, w3, b3, *, block_b, out_dtype):
    """x: (B, IN) f32, B % block_b == 0. Weights bf16, biases f32, hidden lane-padded."""
    B, IN = x.shape
    HP = w1.shape[1]
    OP = w3.shape[1]          # NOT padded: keeps the HBM writeback stream minimal.
    grid = (B // block_b,)

    def resident(a):  # weight/bias stays in VMEM across all batch steps
        return pl.BlockSpec(a.shape, lambda i: (0,) * a.ndim)

    flops = 2 * B * (IN * HP + HP * HP + HP * OP)
    out_itemsize = jnp.dtype(out_dtype).itemsize
    bytes_accessed = (
        x.size * x.dtype.itemsize
        + sum(a.size * a.dtype.itemsize for a in (w1, b1, w2, b2, w3, b3))
        + B * OP * out_itemsize
    )

    return pl.pallas_call(
        mlp_kernel,
        out_shape=jax.ShapeDtypeStruct((B, OP), out_dtype),
        grid=grid,
        in_specs=[
            pl.BlockSpec((block_b, IN), lambda i: (i, 0)),
            resident(w1), resident(b1),
            resident(w2), resident(b2),
            resident(w3), resident(b3),
        ],
        out_specs=pl.BlockSpec((block_b, OP), lambda i: (i, 0)),
        compiler_params=pltpu.CompilerParams(
            dimension_semantics=("parallel",)),
        cost_estimate=pl.CostEstimate(
            flops=flops, transcendentals=0, bytes_accessed=bytes_accessed),
    )(x, w1, b1, w2, b2, w3, b3)


def pad_params(params, hidden_pad):
    """Zero-pad hidden dims to lane-dense width; weights -> bf16, biases -> f32.

    Output feature dim is intentionally left UNPADDED (HBM-writeback bound kernel).
    Zero padding is exact: padded biases are 0, ReLU(0)=0, padded weight rows are 0.
    """
    w1, b1, w2, b2, w3, b3 = params
    out_size = w3.shape[1]

    def pad2(a, rows, cols, dtype):
        r, c = a.shape
        return jnp.pad(a, ((0, rows - r), (0, cols - c))).astype(dtype)

    w1p = pad2(w1, w1.shape[0], hidden_pad, jnp.bfloat16)
    w2p = pad2(w2, hidden_pad, hidden_pad, jnp.bfloat16)
    w3p = pad2(w3, hidden_pad, out_size, jnp.bfloat16)
    b1p = pad2(b1, 1, hidden_pad, jnp.float32)
    b2p = pad2(b2, 1, hidden_pad, jnp.float32)
    b3p = pad2(b3, 1, out_size, jnp.float32)
    return w1p, b1p, w2p, b2p, w3p, b3p


def _pick_batch_tile(B, block_b):
    """Batch tile: multiple of 8 (ideally 256), and >= 2 grid steps when possible
    so the 'parallel' batch axis can shard across v7x's 2 TensorCores."""
    tb = min(block_b, _round_up(B, 8))
    if _round_up(B, tb) // tb < 2 and tb >= 16 and tb % 16 == 0:
        tb //= 2  # still a multiple of 8; gives a 2-step grid
    return tb


def mlp_apply(x, params, *, block_b=512, out_dtype=jnp.float32):
    """x: (B, input_size) f32; params: logical (unpadded) f32 weights/biases."""
    w1 = params[0]
    hidden = w1.shape[1]
    hidden_pad = _round_up(hidden, LANE)
    padded = pad_params(params, hidden_pad)

    B = x.shape[0]
    tb = _pick_batch_tile(B, block_b)
    Bp = _round_up(B, tb)
    xp = x.astype(jnp.float32)
    if Bp != B:
        xp = jnp.pad(xp, ((0, Bp - B), (0, 0)))

    out = _mlp_forward(xp, *padded, block_b=tb, out_dtype=out_dtype)
    return out if Bp == B else out[:B]


def init_params(key, input_size, hidden_size, output_size):
    # Deterministic init mimicking nn.Linear's U(-1/sqrt(fan_in), 1/sqrt(fan_in)).
    ks = jax.random.split(key, 6)

    def lin(kw, kb, fan_in, fan_out):
        bound = 1.0 / jnp.sqrt(jnp.float32(fan_in))
        w = jax.random.uniform(kw, (fan_in, fan_out), jnp.float32, -bound, bound)
        b = jax.random.uniform(kb, (1, fan_out), jnp.float32, -bound, bound)
        return w, b

    w1, b1 = lin(ks[0], ks[1], input_size, hidden_size)
    w2, b2 = lin(ks[2], ks[3], hidden_size, hidden_size)
    w3, b3 = lin(ks[4], ks[5], hidden_size, output_size)
    return w1, b1, w2, b2, w3, b3


def ref_forward(x, params):
    # Plain-JAX reference using the same bf16-MXU-inputs / f32-accumulation path.
    # NOTE: differs from a pure-fp32 PyTorch MLP at the ~1e-3 level.
    w1, b1, w2, b2, w3, b3 = params
    bf = jnp.bfloat16
    h1 = jnp.maximum(jnp.dot(x.astype(bf), w1.astype(bf),
                             preferred_element_type=jnp.float32) + b1, 0.0)
    h2 = jnp.maximum(jnp.dot(h1.astype(bf), w2.astype(bf),
                             preferred_element_type=jnp.float32) + b2, 0.0)
    return jnp.dot(h2.astype(bf), w3.astype(bf),
                   preferred_element_type=jnp.float32) + b3


if __name__ == "__main__":
    input_size, hidden_size, output_size = 16, 32, 8
    batch = 256  # exercises a real 2-step batch grid (tb=128 here)

    key = jax.random.PRNGKey(0)
    kx, kp = jax.random.split(key)
    x = jax.random.normal(kx, (batch, input_size), jnp.float32)
    params = init_params(kp, input_size, hidden_size, output_size)

    out = mlp_apply(x, params)
    jax.block_until_ready(out)

    ref = ref_forward(x, params)
    assert out.shape == (batch, output_size)
    assert jnp.allclose(out, ref, atol=1e-3, rtol=1e-3), float(
        jnp.max(jnp.abs(out - ref)))

    print("KERNEL_OK")
</pallas_src>

<mosaic_0001>
module attributes {stable_mosaic.version = 11 : i64} {
  func.func @mlp_kernel(%arg0: i32, %arg1: memref<128x16xf32, #tpu.memory_space<vmem>>, %arg2: memref<16x128xbf16, #tpu.memory_space<vmem>>, %arg3: memref<1x128xf32, #tpu.memory_space<vmem>>, %arg4: memref<128x128xbf16, #tpu.memory_space<vmem>>, %arg5: memref<1x128xf32, #tpu.memory_space<vmem>>, %arg6: memref<128x8xbf16, #tpu.memory_space<vmem>>, %arg7: memref<1x8xf32, #tpu.memory_space<vmem>>, %arg8: memref<128x8xf32, #tpu.memory_space<vmem>>) attributes {dimension_semantics = [#tpu.dimension_semantics<parallel>], iteration_bounds = array<i64: 2>, scalar_prefetch = 0 : i64, scratch_operands = 0 : i64, tpu.core_type = #tpu.core_type<tc>, window_params = [{transform_indices = @transform_0, window_bounds = array<i64: 128, 16>}, {pipeline_mode = #tpu.pipeline_mode<synchronous>, transform_indices = @transform_1, window_bounds = array<i64: 16, 128>}, {pipeline_mode = #tpu.pipeline_mode<synchronous>, transform_indices = @transform_2, window_bounds = array<i64: 1, 128>}, {pipeline_mode = #tpu.pipeline_mode<synchronous>, transform_indices = @transform_3, window_bounds = array<i64: 128, 128>}, {pipeline_mode = #tpu.pipeline_mode<synchronous>, transform_indices = @transform_4, window_bounds = array<i64: 1, 128>}, {pipeline_mode = #tpu.pipeline_mode<synchronous>, transform_indices = @transform_5, window_bounds = array<i64: 128, 8>}, {pipeline_mode = #tpu.pipeline_mode<synchronous>, transform_indices = @transform_6, window_bounds = array<i64: 1, 8>}, {transform_indices = @transform_7, window_bounds = array<i64: 128, 8>}]} {
    %c0 = arith.constant 0 : index
    %c0_0 = arith.constant 0 : index
    %0 = vector.load %arg1[%c0, %c0_0] : memref<128x16xf32, #tpu.memory_space<vmem>>, vector<128x16xf32>
    %1 = arith.truncf %0 : vector<128x16xf32> to vector<128x16xbf16>
    %c0_1 = arith.constant 0 : index
    %c0_2 = arith.constant 0 : index
    %2 = vector.load %arg2[%c0_1, %c0_2] : memref<16x128xbf16, #tpu.memory_space<vmem>>, vector<16x128xbf16>
    %cst = arith.constant dense<0.000000e+00> : vector<128x128xf32>
    %3 = tpu.matmul %1, %2, %cst {dimension_numbers = #tpu.dot_dimension_numbers<[1], [0], [0], [1], [0, 0, 1, 1], [], []>} : vector<128x16xbf16>, vector<16x128xbf16>, vector<128x128xf32> -> vector<128x128xf32>
    %c0_3 = arith.constant 0 : index
    %c0_4 = arith.constant 0 : index
    %4 = vector.load %arg3[%c0_3, %c0_4] : memref<1x128xf32, #tpu.memory_space<vmem>>, vector<1x128xf32>
    %5 = vector.broadcast %4 : vector<1x128xf32> to vector<128x128xf32>
    %6 = arith.addf %3, %5 : vector<128x128xf32>
    %cst_5 = arith.constant 0.000000e+00 : f32
    %7 = vector.broadcast %cst_5 : f32 to vector<128x128xf32>
    %8 = arith.maximumf %6, %7 : vector<128x128xf32>
    %9 = arith.truncf %8 : vector<128x128xf32> to vector<128x128xbf16>
    %c0_6 = arith.constant 0 : index
    %c0_7 = arith.constant 0 : index
    %10 = vector.load %arg4[%c0_6, %c0_7] : memref<128x128xbf16, #tpu.memory_space<vmem>>, vector<128x128xbf16>
    %cst_8 = arith.constant dense<0.000000e+00> : vector<128x128xf32>
    %11 = tpu.matmul %9, %10, %cst_8 {dimension_numbers = #tpu.dot_dimension_numbers<[1], [0], [0], [1], [0, 0, 1, 1], [], []>} : vector<128x128xbf16>, vector<128x128xbf16>, vector<128x128xf32> -> vector<128x128xf32>
    %c0_9 = arith.constant 0 : index
    %c0_10 = arith.constant 0 : index
    %12 = vector.load %arg5[%c0_9, %c0_10] : memref<1x128xf32, #tpu.memory_space<vmem>>, vector<1x128xf32>
    %13 = vector.broadcast %12 : vector<1x128xf32> to vector<128x128xf32>
    %14 = arith.addf %11, %13 : vector<128x128xf32>
    %cst_11 = arith.constant 0.000000e+00 : f32
    %15 = vector.broadcast %cst_11 : f32 to vector<128x128xf32>
    %16 = arith.maximumf %14, %15 : vector<128x128xf32>
    %17 = arith.truncf %16 : vector<128x128xf32> to vector<128x128xbf16>
    %c0_12 = arith.constant 0 : index
    %c0_13 = arith.constant 0 : index
    %18 = vector.load %arg6[%c0_12, %c0_13] : memref<128x8xbf16, #tpu.memory_space<vmem>>, vector<128x8xbf16>
    %cst_14 = arith.constant dense<0.000000e+00> : vector<128x8xf32>
    %19 = tpu.matmul %17, %18, %cst_14 {dimension_numbers = #tpu.dot_dimension_numbers<[1], [0], [0], [1], [0, 0, 1, 1], [], []>} : vector<128x128xbf16>, vector<128x8xbf16>, vector<128x8xf32> -> vector<128x8xf32>
    %c0_15 = arith.constant 0 : index
    %c0_16 = arith.constant 0 : index
    %20 = vector.load %arg7[%c0_15, %c0_16] : memref<1x8xf32, #tpu.memory_space<vmem>>, vector<1x8xf32>
    %21 = vector.broadcast %20 : vector<1x8xf32> to vector<128x8xf32>
    %22 = arith.addf %19, %21 : vector<128x8xf32>
    %c0_17 = arith.constant 0 : index
    %c0_18 = arith.constant 0 : index
    %23 = vector.load %arg8[%c0_17, %c0_18] : memref<128x8xf32, #tpu.memory_space<vmem>>, vector<128x8xf32>
    tpu.vector_store %arg8[%c0_17, %c0_18], %22 {strides = array<i32>} : memref<128x8xf32, #tpu.memory_space<vmem>>, vector<128x8xf32>,
    return
  }
  func.func @transform_0(%arg0: i32) -> (i32, i32) {
    %c0_i32 = arith.constant 0 : i32
    %c0_i32_0 = arith.constant 0 : i32
    return %arg0, %c0_i32 : i32, i32
  }
  func.func @transform_1(%arg0: i32) -> (i32, i32) {
    %c0_i32 = arith.constant 0 : i32
    %c0_i32_0 = arith.constant 0 : i32
    %c0_i32_1 = arith.constant 0 : i32
    return %c0_i32, %c0_i32_0 : i32, i32
  }
  func.func @transform_2(%arg0: i32) -> (i32, i32) {
    %c0_i32 = arith.constant 0 : i32
    %c0_i32_0 = arith.constant 0 : i32
    %c0_i32_1 = arith.constant 0 : i32
    return %c0_i32, %c0_i32_0 : i32, i32
  }
  func.func @transform_3(%arg0: i32) -> (i32, i32) {
    %c0_i32 = arith.constant 0 : i32
    %c0_i32_0 = arith.constant 0 : i32
    %c0_i32_1 = arith.constant 0 : i32
    return %c0_i32, %c0_i32_0 : i32, i32
  }
  func.func @transform_4(%arg0: i32) -> (i32, i32) {
    %c0_i32 = arith.constant 0 : i32
    %c0_i32_0 = arith.constant 0 : i32
    %c0_i32_1 = arith.constant 0 : i32
    return %c0_i32, %c0_i32_0 : i32, i32
  }
  func.func @transform_5(%arg0: i32) -> (i32, i32) {
    %c0_i32 = arith.constant 0 : i32
    %c0_i32_0 = arith.constant 0 : i32
    %c0_i32_1 = arith.constant 0 : i32
    return %c0_i32, %c0_i32_0 : i32, i32
  }
  func.func @transform_6(%arg0: i32) -> (i32, i32) {
    %c0_i32 = arith.constant 0 : i32
    %c0_i32_0 = arith.constant 0 : i32
    %c0_i32_1 = arith.constant 0 : i32
    return %c0_i32, %c0_i32_0 : i32, i32
  }
  func.func @transform_7(%arg0: i32) -> (i32, i32) {
    %c0_i32 = arith.constant 0 : i32
    %c0_i32_0 = arith.constant 0 : i32
    return %arg0, %c0_i32 : i32, i32
  }
}

</mosaic_0001>

<bundles_post_ra>
// kernel: tpu_custom_call.1
= control target key start
LH: loop header
LB: loop body
LE: loop exit
PB: predicated region body
PF: predicated region fallthrough
CT: control target
= control target key end

     0   :  { %s1136_s24 = smov 0   ;;  %s1280_s0 = inlined_call_operand.vmem [shape: f32[256,16], index: 0, kind: input, shape index: {}]   ;;  %s1281_s1 = inlined_call_operand.vmem [shape: bf16[16,128], index: 1, kind: input, shape index: {}]   ;;  %s1282_s2 = inlined_call_operand.vmem [shape: f32[1,128], index: 2, kind: input, shape index: {}]   ;;  %s1283_s3 = inlined_call_operand.vmem [shape: bf16[128,128], index: 3, kind: input, shape index: {}]   ;;  %s1284_s4 = inlined_call_operand.vmem [shape: f32[1,128], index: 4, kind: input, shape index: {}]   ;;  %s1285_s5 = inlined_call_operand.vmem [shape: bf16[128,8], index: 5, kind: input, shape index: {}]   ;;  %s1286_s6 = inlined_call_operand.vmem [shape: f32[1,8], index: 6, kind: input, shape index: {}]   ;;  %s1287_s7 = inlined_call_operand.vmem [shape: f32[256,8], index: 7, kind: output, shape index: {}]  }
   0x1 LB: > { %s901_s25 = sadd.s32 4294967295, %s1094_s24   ;;  %p905_p0 = scmp.ge.s32.totalorder %s1094_s24, 1  ;;  %s1094_s24 = sphi %s1136_s24, %s17_s24  }
   0x2   : > { %p238_p1 = scmp.lt.s32.totalorder %s1094_s24, 3 }
   0x4   : > { %p239_p2 = pnand %p905_p0, %p238_p1 }
   0x5   : > { %s906_s28 = sshll.u32 (!%p239_p2), %s901_s25, 4 }
   0x6   : > { %242 = sbr.rel (%p239_p2) target bundleno = 656 (0x290), region = 48  ;;  %p271_p3 = scmp.lt.s32.totalorder (!%p239_p2), %s906_s28, 31 }
   0xb   : > { %v1071_v0 = vld [vmem:[%s1281_s1] sm:$0xff]   ;;  %v1072_v1 = vld [vmem:[%s1283_s3 + $0x38] sm:$0xff]   ;;  %s1289_s28 = smov (!%p271_p3, %s906_s28), 31  ;;  %v1073_v2 = vld [vmem:[%s1283_s3 + $0x30] sm:$0xff]   ;;  %vm322_vm0 = vcmask 130048   ;;  %vm828_vm1 = vcmask 64512  }
   0xc   : > { %981 = vmatprep.subr.bf16.mxu0 %v1071_v0  ;;  %999 = vmatprep.subr.bf16.mxu1 %v1072_v1  ;;  %s907_s10 = sshll.u32 %s1289_s28, 3  ;;  %v1074_v3 = vld [vmem:[%s1283_s3 + $0x28] sm:$0xff]   ;;  %v1075_v13 = vld [vmem:[%s1283_s3 + $0x20] sm:$0xff]   ;;  %v1076_v18 = vld [vmem:[%s1283_s3 + $0x18] sm:$0xff]  }
   0xd   : > { %982 = vmatpush3.bf16.msra.mxu0 %v1071_v0  ;;  %1000 = vmatpush3.bf16.msra.mxu1 %v1072_v1  ;;  %s1161_s13 = scalar_lea.vmem %s1280_s0, %s907_s10  ;;  %v1077_v30 = vld [vmem:[%s1283_s3 + $0x10] sm:$0xff]   ;;  %v1078_v31 = vld [vmem:[%s1283_s3 + $0x8] sm:$0xff]   ;;  %v1079_v32 = vld [vmem:[%s1283_s3] sm:$0xff]   ;;  %s1243_s9 = scalar_lea.vmem %s1287_s7, %s907_s10 }
   0xe   : > { %1001 = vmatprep.subr.bf16.mxu1 %v1073_v2  ;;  %v283_v4 = vld [vmem:[%s1161_s13] sm:$0xff]  ;;  %v284_v5 = vld [vmem:[%s1161_s13 + $0x8] sm:$0xff]  ;;  %v285_v6 = vld [vmem:[%s1161_s13 + $0x10] sm:$0xff] }
   0xf   : > { %v299_v7 = vpack.c.bf16 %v284_v5, %v283_v4  ;;  %v286_v8 = vld [vmem:[%s1161_s13 + $0x18] sm:$0xff]  ;;  %v287_v9 = vld [vmem:[%s1161_s13 + $0x20] sm:$0xff]  ;;  %v288_v10 = vld [vmem:[%s1161_s13 + $0x28] sm:$0xff] }
  0x10   : > { %v300_v11 = vpack.c.bf16 %v286_v8, %v285_v6  ;;  %v301_v12 = vpack.c.bf16 %v288_v10, %v287_v9  ;;  %v289_v14 = vld [vmem:[%s1161_s13 + $0x30] sm:$0xff]  ;;  %v290_v15 = vld [vmem:[%s1161_s13 + $0x38] sm:$0xff]  ;;  %v291_v16 = vld [vmem:[%s1161_s13 + $0x40] sm:$0xff] }
  0x11   : > { %1002 = vmatpush3.bf16.msra.mxu1 %v1073_v2  ;;  %983 = vmatprep.mubr.msk.bf16.mxu0 %vm322_vm0, %v299_v7  ;;  %v292_v17 = vld [vmem:[%s1161_s13 + $0x48] sm:$0xff]  ;;  %v302_v19 = vpack.c.bf16 %v290_v15, %v289_v14  ;;  %v293_v21 = vld [vmem:[%s1161_s13 + $0x50] sm:$0xff]  ;;  %v294_v22 = vld [vmem:[%s1161_s13 + $0x58] sm:$0xff] }
  0x12   : > { %1003 = vmatprep.subr.bf16.mxu1 %v1074_v3  ;;  %984 = vmatmul.mubr.msk.bf16.vlgmr.msra.gmra.mxu0 %vm322_vm0, %v300_v11  ;;  %v303_v20 = vpack.c.bf16 %v292_v17, %v291_v16  ;;  %v295_v23 = vld [vmem:[%s1161_s13 + $0x60] sm:$0xff]  ;;  %v296_v24 = vld [vmem:[%s1161_s13 + $0x68] sm:$0xff]  ;;  %v304_v25 = vpack.c.bf16 %v294_v22, %v293_v21  ;;  %v297_v27 = vld [vmem:[%s1161_s13 + $0x70] sm:$0xff] }
  0x13   : > { %987 = vmatprep.mubr.msk.bf16.mxu0 %vm322_vm0, %v301_v12  ;;  %v305_v26 = vpack.c.bf16 %v296_v24, %v295_v23  ;;  %v298_v28 = vld [vmem:[%s1161_s13 + $0x78] sm:$0xff]  ;;  %v1081_v34 = vld [vmem:[%s1285_s5 + $0x30] sm:$0xff]   ;;  %v1082_v35 = vld [vmem:[%s1285_s5 + $0x28] sm:$0xff]  }
  0x14   : > { %v306_v29 = vpack.c.bf16 %v298_v28, %v297_v27  ;;  %v1080_v33 = vld [vmem:[%s1285_s5 + $0x38] sm:$0xff]   ;;  %v1083_v36 = vld [vmem:[%s1285_s5 + $0x20] sm:$0xff]  }
  0x15   : > { %1004 = vmatpush3.bf16.msra.mxu1 %v1074_v3  ;;  %1031 = vmatprep.subr.bf16.mxu0 %v1080_v33  ;;  %v1084_v37 = vld [vmem:[%s1285_s5 + $0x18] sm:$0xff]   ;;  %v910_v40 = vld [vmem:[%s1282_s2] ss:$0 sm:$0xff] }
  0x16   : > { %1005 = vmatprep.subr.bf16.mxu1 %v1075_v13  ;;  %1032 = vmatpush3.bf16.msra.mxu0 %v1080_v33  ;;  %v1087_v33 = vld [vmem:[%s1285_s5] sm:$0xff]  }
  0x17   : > { %1033 = vmatprep.subr.bf16.mxu0 %v1081_v34 }
  0x19   : > { %1006 = vmatpush3.bf16.msra.mxu1 %v1075_v13 }
  0x1a   : > { %1007 = vmatprep.subr.bf16.mxu1 %v1076_v18  ;;  %988 = vmatmul.mubr.msk.bf16.gmra.mxu0 %vm322_vm0, %v302_v19 }
  0x1b   : > { %991 = vmatprep.mubr.msk.bf16.mxu0 %vm322_vm0, %v303_v20  ;;  %1034 = vmatpush3.bf16.msra.mxu0 %v1081_v34 }
  0x1c   : > { %1035 = vmatprep.subr.bf16.mxu0 %v1082_v35 }
  0x1d   : > { %1008 = vmatpush3.bf16.msra.mxu1 %v1076_v18 }
  0x1e   : > { %1009 = vmatprep.subr.bf16.mxu1 %v1077_v30 }
  0x1f   : > { %1036 = vmatpush3.bf16.msra.mxu0 %v1082_v35 }
  0x20   : > { %1037 = vmatprep.subr.bf16.mxu0 %v1083_v36 }
  0x21   : > { %1010 = vmatpush3.bf16.msra.mxu1 %v1077_v30 }
  0x22   : > { %992 = vmatmul.mubr.msk.bf16.gmra.mxu0 %vm322_vm0, %v304_v25  ;;  %1011 = vmatprep.subr.bf16.mxu1 %v1078_v31 }
  0x23   : > { %995 = vmatprep.mubr.msk.bf16.mxu0 %vm322_vm0, %v305_v26  ;;  %1038 = vmatpush3.bf16.msra.mxu0 %v1083_v36  ;;  %v920_v36 = vld [vmem:[%s1284_s4] ss:$0 sm:$0xff] }
  0x24   : > { %1039 = vmatprep.subr.bf16.mxu0 %v1084_v37 }
  0x25   : > { %1012 = vmatpush3.bf16.msra.mxu1 %v1078_v31  ;;  %v1085_v31 = vld [vmem:[%s1285_s5 + $0x10] sm:$0xff]  }
  0x26   : > { %1013 = vmatprep.subr.bf16.mxu1 %v1079_v32 }
  0x27   : > { %1040 = vmatpush3.bf16.msra.mxu0 %v1084_v37 }
  0x28   : > { %1041 = vmatprep.subr.bf16.mxu0 %v1085_v31 }
  0x29   : > { %1014 = vmatpush3.bf16.msra.mxu1 %v1079_v32  ;;  %v1086_v32 = vld [vmem:[%s1285_s5 + $0x8] sm:$0xff]  }
  0x2a   : > { %996 = vmatmul.mubr.msk.bf16.gmra.mxu0 %vm322_vm0, %v306_v29 }
  0x2b   : > { %1042 = vmatpush3.bf16.msra.mxu0 %v1085_v31 }
  0x2c   : > { %1043 = vmatprep.subr.bf16.mxu0 %v1086_v32 }
  0x2f   : > { %1044 = vmatpush3.bf16.msra.mxu0 %v1086_v32 }
  0x30   : > { %1045 = vmatprep.subr.bf16.mxu0 %v1087_v33 }
  0x33   : > { %1046 = vmatpush3.bf16.msra.mxu0 %v1087_v33 }
  0xd2   : > { %v985_v38 = vpop.f32.mrf.mxu0 }
  0xd3   : > { %v390_v44 = vadd.f32 %v985_v38, %v910_v40 }
  0xd4   : > { %v381_v39 = vpop.f32.mrf.mxu0 }
  0xd5   : > { %v382_v42 = vadd.f32 %v910_v40, %v381_v39  ;;  %v446_v51 = vmax.f32 %v390_v44, 0.0 }
  0xd6   : > { %v986_v41 = vpop.f32.mrf.mxu0 }
  0xd7   : > { %v393_v43 = vadd.f32 %v986_v41, %v910_v40  ;;  %v444_v49 = vmax.f32 %v382_v42, 0.0 }
  0xd8   : > { %v384_v45 = vpop.f32.mrf.mxu0 }
  0xd9   : > { %v385_v46 = vadd.f32 %v910_v40, %v384_v45  ;;  %v447_v47 = vmax.f32 %v393_v43, 0.0 }
  0xda   : > { %v989_v48 = vpop.f32.mrf.mxu0 }
  0xdb   : > { %v445_v50 = vmax.f32 %v385_v46, 0.0  ;;  %v461_v54 = vpack.c.bf16 %v447_v47, %v446_v51  ;;  %v406_v58 = vadd.f32 %v989_v48, %v910_v40 }
  0xdc   : > { %v397_v52 = vpop.f32.mrf.mxu0 }
  0xdd   : > { %v460_v53 = vpack.c.bf16 %v445_v50, %v444_v49  ;;  %v398_v56 = vadd.f32 %v910_v40, %v397_v52  ;;  %v450_v1 = vmax.f32 %v406_v58, 0.0 }
  0xde   : > { %v990_v55 = vpop.f32.mrf.mxu0 }
  0xdf   : > { %v409_v57 = vadd.f32 %v990_v55, %v910_v40  ;;  %1015 = vmatprep.mubr.bf16.mxu1 %v460_v53  ;;  %v448_v63 = vmax.f32 %v398_v56, 0.0 }
  0xe0   : > { %v400_v59 = vpop.f32.mrf.mxu0  ;;  %1016 = vmatmul.mubr.bf16.vlgmr.msra.gmra.mxu1 %v461_v54 }
  0xe1   : > { %v401_v60 = vadd.f32 %v910_v40, %v400_v59  ;;  %v451_v61 = vmax.f32 %v409_v57, 0.0 }
  0xe2   : > { %v993_v62 = vpop.f32.mrf.mxu0 }
  0xe3   : > { %v449_v0 = vmax.f32 %v401_v60, 0.0  ;;  %v463_v4 = vpack.c.bf16 %v451_v61, %v450_v1  ;;  %v422_v8 = vadd.f32 %v993_v62, %v910_v40 }
  0xe4   : > { %v413_v2 = vpop.f32.mrf.mxu0 }
  0xe5   : > { %v462_v3 = vpack.c.bf16 %v449_v0, %v448_v63  ;;  %v414_v6 = vadd.f32 %v910_v40, %v413_v2  ;;  %v454_v15 = vmax.f32 %v422_v8, 0.0 }
  0xe6   : > { %v994_v5 = vpop.f32.mrf.mxu0 }
  0xe7   : > { %v425_v7 = vadd.f32 %v994_v5, %v910_v40  ;;  %1019 = vmatprep.mubr.bf16.mxu1 %v462_v3  ;;  %v452_v13 = vmax.f32 %v414_v6, 0.0 }
  0xe8   : > { %v416_v9 = vpop.f32.mrf.mxu0  ;;  %1020 = vmatmul.mubr.bf16.gmra.mxu1 %v463_v4 }
  0xe9   : > { %v417_v10 = vadd.f32 %v910_v40, %v416_v9  ;;  %v455_v11 = vmax.f32 %v425_v7, 0.0 }
  0xea   : > { %v997_v12 = vpop.f32.mrf.mxu0 }
  0xeb   : > { %v453_v14 = vmax.f32 %v417_v10, 0.0  ;;  %v465_v18 = vpack.c.bf16 %v455_v11, %v454_v15  ;;  %v438_v22 = vadd.f32 %v997_v12, %v910_v40 }
  0xec   : > { %v429_v16 = vpop.f32.mrf.mxu0 }
  0xed   : > { %v464_v17 = vpack.c.bf16 %v453_v14, %v452_v13  ;;  %v430_v20 = vadd.f32 %v910_v40, %v429_v16  ;;  %v458_v28 = vmax.f32 %v438_v22, 0.0 }
  0xee   : > { %v998_v19 = vpop.f32.mrf.mxu0 }
  0xef   : > { %v441_v21 = vadd.f32 %v998_v19, %v910_v40  ;;  %1023 = vmatprep.mubr.bf16.mxu1 %v464_v17  ;;  %v456_v26 = vmax.f32 %v430_v20, 0.0 }
  0xf0   : > { %v432_v23 = vpop.f32.mrf.mxu0  ;;  %1024 = vmatmul.mubr.bf16.gmra.mxu1 %v465_v18 }
  0xf1   : > { %v433_v24 = vadd.f32 %v910_v40, %v432_v23  ;;  %v459_v25 = vmax.f32 %v441_v21, 0.0 }
  0xf3   : > { %v457_v27 = vmax.f32 %v433_v24, 0.0  ;;  %v467_v30 = vpack.c.bf16 %v459_v25, %v458_v28 }
  0xf5   : > { %v466_v29 = vpack.c.bf16 %v457_v27, %v456_v26  ;;  %v929_v27 = vld [vmem:[%s1286_s6] ss:$0 sm:$0xff] }
  0xf7   : > { %1027 = vmatprep.mubr.bf16.mxu1 %v466_v29 }
  0xf8   : > { %1028 = vmatmul.mubr.bf16.gmra.mxu1 %v467_v30 }
 0x1a0   : > { %v1017_v34 = vpop.f32.mrf.mxu1 }
 0x1a1   : > { %v582_v40 = vadd.f32 %v1017_v34, %v920_v36 }
 0x1a2   : > { %v573_v35 = vpop.f32.mrf.mxu1 }
 0x1a3   : > { %v574_v38 = vadd.f32 %v920_v36, %v573_v35  ;;  %v638_v47 = vmax.f32 %v582_v40, 0.0 }
 0x1a4   : > { %v1018_v37 = vpop.f32.mrf.mxu1 }
 0x1a5   : > { %v585_v39 = vadd.f32 %v1018_v37, %v920_v36  ;;  %v636_v45 = vmax.f32 %v574_v38, 0.0 }
 0x1a6   : > { %v576_v41 = vpop.f32.mrf.mxu1 }
 0x1a7   : > { %v577_v42 = vadd.f32 %v920_v36, %v576_v41  ;;  %v639_v43 = vmax.f32 %v585_v39, 0.0 }
 0x1a8   : > { %v1021_v44 = vpop.f32.mrf.mxu1 }
 0x1a9   : > { %v637_v46 = vmax.f32 %v577_v42, 0.0  ;;  %v653_v50 = vpack.c.bf16 %v639_v43, %v638_v47  ;;  %v598_v54 = vadd.f32 %v1021_v44, %v920_v36 }
 0x1aa   : > { %v589_v48 = vpop.f32.mrf.mxu1 }
 0x1ab   : > { %v652_v49 = vpack.c.bf16 %v637_v46, %v636_v45  ;;  %v590_v52 = vadd.f32 %v920_v36, %v589_v48  ;;  %v642_v61 = vmax.f32 %v598_v54, 0.0 }
 0x1ac   : > { %v1022_v51 = vpop.f32.mrf.mxu1 }
 0x1ad   : > { %v601_v53 = vadd.f32 %v1022_v51, %v920_v36  ;;  %1047 = vmatprep.mubr.bf16.mxu0 %v652_v49  ;;  %v640_v59 = vmax.f32 %v590_v52, 0.0 }
 0x1ae   : > { %v592_v55 = vpop.f32.mrf.mxu1  ;;  %1048 = vmatmul.mubr.bf16.vlgmr.msra.gmra.mxu0 %v653_v50 }
 0x1af   : > { %v593_v56 = vadd.f32 %v920_v36, %v592_v55  ;;  %v643_v57 = vmax.f32 %v601_v53, 0.0 }
 0x1b0   : > { %v1025_v58 = vpop.f32.mrf.mxu1 }
 0x1b1   : > { %v641_v60 = vmax.f32 %v593_v56, 0.0  ;;  %v655_v0 = vpack.c.bf16 %v643_v57, %v642_v61  ;;  %v614_v4 = vadd.f32 %v1025_v58, %v920_v36 }
 0x1b2   : > { %v605_v62 = vpop.f32.mrf.mxu1 }
 0x1b3   : > { %v654_v63 = vpack.c.bf16 %v641_v60, %v640_v59  ;;  %v606_v2 = vadd.f32 %v920_v36, %v605_v62  ;;  %v646_v11 = vmax.f32 %v614_v4, 0.0 }
 0x1b4   : > { %v1026_v1 = vpop.f32.mrf.mxu1 }
 0x1b5   : > { %v617_v3 = vadd.f32 %v1026_v1, %v920_v36  ;;  %1051 = vmatprep.mubr.bf16.mxu0 %v654_v63  ;;  %v644_v9 = vmax.f32 %v606_v2, 0.0 }
 0x1b6   : > { %v608_v5 = vpop.f32.mrf.mxu1  ;;  %1052 = vmatmul.mubr.bf16.gmra.mxu0 %v655_v0 }
 0x1b7   : > { %v609_v6 = vadd.f32 %v920_v36, %v608_v5  ;;  %v647_v7 = vmax.f32 %v617_v3, 0.0 }
 0x1b8   : > { %v1029_v8 = vpop.f32.mrf.mxu1 }
 0x1b9   : > { %v645_v10 = vmax.f32 %v609_v6, 0.0  ;;  %v657_v14 = vpack.c.bf16 %v647_v7, %v646_v11  ;;  %v630_v18 = vadd.f32 %v1029_v8, %v920_v36 }
 0x1ba   : > { %v621_v12 = vpop.f32.mrf.mxu1 }
 0x1bb   : > { %v656_v13 = vpack.c.bf16 %v645_v10, %v644_v9  ;;  %v622_v16 = vadd.f32 %v920_v36, %v621_v12  ;;  %v650_v24 = vmax.f32 %v630_v18, 0.0 }
 0x1bc   : > { %v1030_v15 = vpop.f32.mrf.mxu1 }
 0x1bd   : > { %v633_v17 = vadd.f32 %v1030_v15, %v920_v36  ;;  %1055 = vmatprep.mubr.bf16.mxu0 %v656_v13  ;;  %v648_v22 = vmax.f32 %v622_v16, 0.0 }
 0x1be   : > { %v624_v19 = vpop.f32.mrf.mxu1  ;;  %1056 = vmatmul.mubr.bf16.gmra.mxu0 %v657_v14 }
 0x1bf   : > { %v625_v20 = vadd.f32 %v920_v36, %v624_v19  ;;  %v651_v21 = vmax.f32 %v633_v17, 0.0 }
 0x1c1   : > { %v649_v23 = vmax.f32 %v625_v20, 0.0  ;;  %v659_v26 = vpack.c.bf16 %v651_v21, %v650_v24 }
 0x1c3   : > { %v658_v25 = vpack.c.bf16 %v649_v23, %v648_v22 }
 0x1c5   : > { %1059 = vmatprep.mubr.bf16.mxu0 %v658_v25 }
 0x1c6   : > { %1060 = vmatmul.mubr.bf16.gmra.mxu0 %v659_v26 }
 0x26e   : > { %v1049_v28 = vpop.f32.mrf.mxu0 }
 0x26f   : > { %v774_v29 = vadd.f32 %v1049_v28, %v929_v27 }
 0x270   : > { %v765_v30 = vpop.f32.mrf.mxu0 }
 0x271   : > { %831 = vst.msk [vmem:[%s1243_s9 + $0x10] sm:$0xff] %vm828_vm1, %v774_v29  ;;  %v766_v31 = vadd.f32 %v929_v27, %v765_v30 }
 0x272   : > { %v1050_v32 = vpop.f32.mrf.mxu0 }
 0x273   : > { %829 = vst.msk [vmem:[%s1243_s9] sm:$0xff] %vm828_vm1, %v766_v31  ;;  %v777_v33 = vadd.f32 %v1050_v32, %v929_v27 }
 0x274   : > { %v768_v34 = vpop.f32.mrf.mxu0 }
 0x275   : > { %832 = vst.msk [vmem:[%s1243_s9 + $0x18] sm:$0xff] %vm828_vm1, %v777_v33  ;;  %v769_v35 = vadd.f32 %v929_v27, %v768_v34 }
 0x276   : > { %v1053_v36 = vpop.f32.mrf.mxu0 }
 0x277   : > { %830 = vst.msk [vmem:[%s1243_s9 + $0x8] sm:$0xff] %vm828_vm1, %v769_v35  ;;  %v790_v37 = vadd.f32 %v1053_v36, %v929_v27 }
 0x278   : > { %v781_v38 = vpop.f32.mrf.mxu0 }
 0x279   : > { %835 = vst.msk [vmem:[%s1243_s9 + $0x30] sm:$0xff] %vm828_vm1, %v790_v37  ;;  %v782_v39 = vadd.f32 %v929_v27, %v781_v38 }
 0x27a   : > { %v1054_v40 = vpop.f32.mrf.mxu0 }
 0x27b   : > { %833 = vst.msk [vmem:[%s1243_s9 + $0x20] sm:$0xff] %vm828_vm1, %v782_v39  ;;  %v793_v41 = vadd.f32 %v1054_v40, %v929_v27 }
 0x27c   : > { %v784_v42 = vpop.f32.mrf.mxu0 }
 0x27d   : > { %836 = vst.msk [vmem:[%s1243_s9 + $0x38] sm:$0xff] %vm828_vm1, %v793_v41  ;;  %v785_v43 = vadd.f32 %v929_v27, %v784_v42 }
 0x27e   : > { %v1057_v44 = vpop.f32.mrf.mxu0 }
 0x27f   : > { %834 = vst.msk [vmem:[%s1243_s9 + $0x28] sm:$0xff] %vm828_vm1, %v785_v43  ;;  %v806_v45 = vadd.f32 %v1057_v44, %v929_v27 }
 0x280   : > { %v797_v46 = vpop.f32.mrf.mxu0 }
 0x281   : > { %839 = vst.msk [vmem:[%s1243_s9 + $0x50] sm:$0xff] %vm828_vm1, %v806_v45  ;;  %v798_v47 = vadd.f32 %v929_v27, %v797_v46 }
 0x282   : > { %v1058_v48 = vpop.f32.mrf.mxu0 }
 0x283   : > { %837 = vst.msk [vmem:[%s1243_s9 + $0x40] sm:$0xff] %vm828_vm1, %v798_v47  ;;  %v809_v49 = vadd.f32 %v1058_v48, %v929_v27 }
 0x284   : > { %v800_v50 = vpop.f32.mrf.mxu0 }
 0x285   : > { %840 = vst.msk [vmem:[%s1243_s9 + $0x58] sm:$0xff] %vm828_vm1, %v809_v49  ;;  %v801_v51 = vadd.f32 %v929_v27, %v800_v50 }
 0x286   : > { %v1061_v52 = vpop.f32.mrf.mxu0 }
 0x287   : > { %838 = vst.msk [vmem:[%s1243_s9 + $0x48] sm:$0xff] %vm828_vm1, %v801_v51  ;;  %v822_v53 = vadd.f32 %v1061_v52, %v929_v27 }
 0x288   : > { %v813_v54 = vpop.f32.mrf.mxu0 }
 0x289   : > { %843 = vst.msk [vmem:[%s1243_s9 + $0x70] sm:$0xff] %vm828_vm1, %v822_v53  ;;  %v814_v55 = vadd.f32 %v929_v27, %v813_v54 }
 0x28a   : > { %v1062_v56 = vpop.f32.mrf.mxu0 }
 0x28b   : > { %841 = vst.msk [vmem:[%s1243_s9 + $0x60] sm:$0xff] %vm828_vm1, %v814_v55  ;;  %v825_v57 = vadd.f32 %v1062_v56, %v929_v27 }
 0x28c   : > { %v816_v58 = vpop.f32.mrf.mxu0 }
 0x28d   : > { %844 = vst.msk [vmem:[%s1243_s9 + $0x78] sm:$0xff] %vm828_vm1, %v825_v57  ;;  %v817_v59 = vadd.f32 %v929_v27, %v816_v58 }
 0x28f   : > { %842 = vst.msk [vmem:[%s1243_s9 + $0x68] sm:$0xff] %vm828_vm1, %v817_v59 }
 0x290 PF: > { %s17_s24 = sadd.s32 1, %s1094_s24  }
 0x291   : > { %p14_p4 = scmp.ge.s32.totalorder %s17_s24, 4  }
 0x293   :  { %16 = sbr.rel (!%p14_p4) target bundleno = 1 (0x1), region = 78 }

</bundles_post_ra>
